<compile_context>
chip_gen: v6e
topology: v6e:2x2x1
jax: 0.10.0
libtpu: 0.0.40
codegen_flags: <defaults>
</compile_context>

<pallas_src>
import jax
import jax.numpy as jnp
from jax.experimental import pallas as pl
from jax.experimental.pallas import tpu as pltpu

D_FEAT = 512
LANE = 128
SMALL_BATCH_FAST_PATH = 64


def _round_up(x, m):
    return pl.cdiv(x, m) * m


def _linear_kernel(x_ref, w_ref, b_ref, o_ref):
    # x_ref: (TB, D) f32 ; w_ref: (D, C_pad) bf16 ; b_ref: (1, C_pad) f32 ;
    # o_ref: (TB, C_pad) f32.
    # Cast activations to the MXU-native compute dtype *inside* the kernel so
    # the wrapper never materializes an extra HBM pass over x; the cast is a
    # cheap VPU op fully hidden under the streaming DMA.
    x = x_ref[...].astype(w_ref.dtype)
    acc = jnp.dot(x, w_ref[...], preferred_element_type=jnp.float32)
    o_ref[...] = (acc + b_ref[...]).astype(o_ref.dtype)


def prepare_linear_head(weight, bias, compute_dtype=jnp.bfloat16):
    """One-time setup for the frozen linear-eval head.

    Hoists the (C, D) -> (D, C) transpose out of the per-call path and pads
    the class axis up to a multiple of 128 so the kernel output is lane-dense.
    Returns (w_t_padded (D, C_pad), bias_padded (1, C_pad) f32, num_classes).
    """
    C, D = weight.shape
    C_pad = _round_up(max(C, LANE), LANE)
    w_t = jnp.zeros((D, C_pad), dtype=compute_dtype)
    w_t = w_t.at[:, :C].set(weight.T.astype(compute_dtype))
    b_p = jnp.zeros((1, C_pad), dtype=jnp.float32)
    b_p = b_p.at[:, :C].set(bias.astype(jnp.float32))
    return w_t, b_p, C


def _choose_batch_tile(B, block_b, sublane):
    # Validate caller-supplied block_b against the sublane quantum.
    block_b = max(sublane, (int(block_b) // sublane) * sublane)
    # Aim for >= 2 grid steps so ("parallel",) can shard batch tiles across
    # both TensorCores on megacore parts (v7x); cap at block_b for v5e/v6e.
    half = _round_up(pl.cdiv(B, 2), sublane)
    return max(sublane, min(block_b, half))


def linear_head(feats, w_t, b_p, num_classes, *, block_b=1024, slice_classes=True):
    """feats: (B, 512) f32; w_t: (512, C_pad) bf16 pre-transposed/padded; b_p: (1, C_pad) f32."""
    B, D = feats.shape
    C_pad = w_t.shape[1]

    # Small-batch fast path: kernel launch + tile padding would dominate.
    if B < SMALL_BATCH_FAST_PATH:
        out = jnp.dot(feats.astype(w_t.dtype), w_t,
                      preferred_element_type=jnp.float32) + b_p
        return out[:, :num_classes] if slice_classes else out

    sublane = max(8, 32 // jnp.dtype(feats.dtype).itemsize)  # 8 f32 / 16 bf16
    TB = _choose_batch_tile(B, block_b, sublane)
    grid = (pl.cdiv(B, TB),)   # last tile may be partial; OOB rows masked on store

    w_itemsize = jnp.dtype(w_t.dtype).itemsize
    x_itemsize = jnp.dtype(feats.dtype).itemsize
    cost = pl.CostEstimate(
        flops=2 * B * D * C_pad,
        transcendentals=0,
        bytes_accessed=(B * D * x_itemsize        # x
                        + D * C_pad * w_itemsize  # weight (resident)
                        + C_pad * 4               # bias
                        + B * C_pad * 4),         # out
    )

    out = pl.pallas_call(
        _linear_kernel,
        out_shape=jax.ShapeDtypeStruct((B, C_pad), jnp.float32),
        grid_spec=pltpu.PrefetchScalarGridSpec(
            num_scalar_prefetch=0,
            grid=grid,
            in_specs=[
                pl.BlockSpec((TB, D), lambda i: (i, 0)),      # streamed batch tile
                pl.BlockSpec((D, C_pad), lambda i: (0, 0)),   # weight resident
                pl.BlockSpec((1, C_pad), lambda i: (0, 0)),   # bias resident
            ],
            out_specs=pl.BlockSpec((TB, C_pad), lambda i: (i, 0)),
        ),
        compiler_params=pltpu.CompilerParams(
            dimension_semantics=("parallel",),  # shard batch tiles across TCs (v7x)
        ),
        cost_estimate=cost,
    )(feats, w_t, b_p)

    # NOTE: padded class columns are zero (not -inf).  If a consumer takes the
    # padded (B, C_pad) logits (slice_classes=False, avoids a lane-narrowing
    # copy), it must mask columns >= num_classes before softmax/argmax.
    return out[:, :num_classes] if slice_classes else out


def encoder_stub(x):
    # Frozen encoder stand-in: identity over 512-d features, gradients blocked
    # to mirror `with torch.no_grad():`.
    # TODO(synk): replace with the real encoder forward when its architecture is known.
    return jax.lax.stop_gradient(x)


def classifier_forward(x, w_t, b_p, num_classes):
    feats = encoder_stub(x)
    return linear_head(feats, w_t, b_p, num_classes)


if __name__ == "__main__":
    num_classes = 10
    D = D_FEAT

    key = jax.random.PRNGKey(0)
    kx_small, kx_big, kw, kb = jax.random.split(key, 4)

    # fc parameters (nn.Linear(512, num_classes)): weight (C, 512), bias (C,).
    bound = 1.0 / jnp.sqrt(D)
    weight = jax.random.uniform(kw, (num_classes, D), minval=-bound, maxval=bound,
                                dtype=jnp.float32)
    bias = jax.random.uniform(kb, (num_classes,), minval=-bound, maxval=bound,
                              dtype=jnp.float32)

    # One-time setup: transpose + pad the frozen weight, pad the bias.
    w_t, b_p, C = prepare_linear_head(weight, bias, compute_dtype=jnp.bfloat16)

    def check(x):
        out = classifier_forward(x, w_t, b_p, C)
        out = jax.block_until_ready(out)
        assert out.shape == (x.shape[0], num_classes), out.shape
        # Tight check vs. reference using the same bf16-rounded operands (f32 acc).
        x_bf = x.astype(jnp.bfloat16).astype(jnp.float32)
        w_bf = weight.astype(jnp.bfloat16).astype(jnp.float32)
        ref_bf = jax.lax.stop_gradient(x_bf) @ w_bf.T + bias
        assert jnp.allclose(out, ref_bf, atol=1e-4, rtol=1e-4), "mismatch vs bf16-operand reference"
        # Loose sanity check vs. full-f32 reference (bf16 rounding error only).
        ref_f32 = jax.lax.stop_gradient(x) @ weight.T + bias
        assert jnp.allclose(out, ref_f32, atol=5e-2, rtol=5e-2), "mismatch vs f32 reference"

    # Small batch (B=2): exercises the XLA fast path (matches module demo scale).
    x_small = jax.random.normal(kx_small, (2, D), dtype=jnp.float32)
    check(x_small)

    # Larger batch: exercises the Pallas kernel, including a partial final
    # batch tile (B=200 -> TB=104, grid=(2,), last tile masked on store).
    x_big = jax.random.normal(kx_big, (200, D), dtype=jnp.float32)
    check(x_big)

    print("KERNEL_OK")
</pallas_src>

<mosaic_0001>
module attributes {stable_mosaic.version = 11 : i64} {
  func.func @_linear_kernel(%arg0: i32, %arg1: memref<104x512xf32, #tpu.memory_space<vmem>>, %arg2: memref<512x128xbf16, #tpu.memory_space<vmem>>, %arg3: memref<1x128xf32, #tpu.memory_space<vmem>>, %arg4: memref<104x128xf32, #tpu.memory_space<vmem>>) attributes {dimension_semantics = [#tpu.dimension_semantics<parallel>], iteration_bounds = array<i64: 2>, scalar_prefetch = 0 : i64, scratch_operands = 0 : i64, tpu.core_type = #tpu.core_type<tc>, window_params = [{transform_indices = @transform_0, window_bounds = array<i64: 104, 512>}, {pipeline_mode = #tpu.pipeline_mode<synchronous>, transform_indices = @transform_1, window_bounds = array<i64: 512, 128>}, {pipeline_mode = #tpu.pipeline_mode<synchronous>, transform_indices = @transform_2, window_bounds = array<i64: 1, 128>}, {transform_indices = @transform_3, window_bounds = array<i64: 104, 128>}]} {
    %c0 = arith.constant 0 : index
    %c0_0 = arith.constant 0 : index
    %0 = vector.load %arg1[%c0, %c0_0] : memref<104x512xf32, #tpu.memory_space<vmem>>, vector<104x512xf32>
    %1 = arith.truncf %0 : vector<104x512xf32> to vector<104x512xbf16>
    %c0_1 = arith.constant 0 : index
    %c0_2 = arith.constant 0 : index
    %2 = vector.load %arg2[%c0_1, %c0_2] : memref<512x128xbf16, #tpu.memory_space<vmem>>, vector<512x128xbf16>
    %cst = arith.constant dense<0.000000e+00> : vector<104x128xf32>
    %3 = tpu.matmul %1, %2, %cst {dimension_numbers = #tpu.dot_dimension_numbers<[1], [0], [0], [1], [0, 0, 1, 1], [], []>} : vector<104x512xbf16>, vector<512x128xbf16>, vector<104x128xf32> -> vector<104x128xf32>
    %c0_3 = arith.constant 0 : index
    %c0_4 = arith.constant 0 : index
    %4 = vector.load %arg3[%c0_3, %c0_4] : memref<1x128xf32, #tpu.memory_space<vmem>>, vector<1x128xf32>
    %5 = vector.broadcast %4 : vector<1x128xf32> to vector<104x128xf32>
    %6 = arith.addf %3, %5 : vector<104x128xf32>
    %c0_5 = arith.constant 0 : index
    %c0_6 = arith.constant 0 : index
    %7 = vector.load %arg4[%c0_5, %c0_6] : memref<104x128xf32, #tpu.memory_space<vmem>>, vector<104x128xf32>
    tpu.vector_store %arg4[%c0_5, %c0_6], %6 {strides = array<i32>} : memref<104x128xf32, #tpu.memory_space<vmem>>, vector<104x128xf32>,
    return
  }
  func.func @transform_0(%arg0: i32) -> (i32, i32) {
    %c0_i32 = arith.constant 0 : i32
    %c0_i32_0 = arith.constant 0 : i32
    return %arg0, %c0_i32 : i32, i32
  }
  func.func @transform_1(%arg0: i32) -> (i32, i32) {
    %c0_i32 = arith.constant 0 : i32
    %c0_i32_0 = arith.constant 0 : i32
    %c0_i32_1 = arith.constant 0 : i32
    return %c0_i32, %c0_i32_0 : i32, i32
  }
  func.func @transform_2(%arg0: i32) -> (i32, i32) {
    %c0_i32 = arith.constant 0 : i32
    %c0_i32_0 = arith.constant 0 : i32
    %c0_i32_1 = arith.constant 0 : i32
    return %c0_i32, %c0_i32_0 : i32, i32
  }
  func.func @transform_3(%arg0: i32) -> (i32, i32) {
    %c0_i32 = arith.constant 0 : i32
    %c0_i32_0 = arith.constant 0 : i32
    return %arg0, %c0_i32 : i32, i32
  }
}

</mosaic_0001>

<bundles_post_ra>
// kernel: tpu_custom_call.1
= control target key start
LH: loop header
LB: loop body
LE: loop exit
PB: predicated region body
PF: predicated region fallthrough
CT: control target
= control target key end

     0   :  { %8 = vsyncpa [#allocation3], 0  ;;  %s1557_s0 = inlined_call_operand.hbm [shape: f32[200,512], index: 0, kind: input, shape index: {}]   ;;  %s1558_s1 = inlined_call_operand.hbm [shape: bf16[512,128], index: 1, kind: input, shape index: {}]   ;;  %s1559_s2 = inlined_call_operand.vmem [shape: f32[1,128], index: 2, kind: input, shape index: {}]   ;;  %s1560_s3 = inlined_call_operand.hbm [shape: f32[200,128], index: 3, kind: output, shape index: {}]  }
   0x1   :  { %10 = vsyncpa [#allocation3 + $0x1], 0 }
   0x2   :  { %11 = vsyncpa [#allocation6], 0 }
   0x3   :  { %12 = vsyncpa [#allocation4], 0 }
   0x4   :  { %14 = vsyncpa [#allocation4 + $0x1], 0  ;;  %s1275_s12 = smov 0   ;;  %s1277_s13 = smov 0  }
   0x5   :  { %s1279_s14 = smov 0   ;;  %s1281_s15 = smov 0  }
   0x6 LB: > { %s1296_s16 = sadd.s32 4294967295, %s1244_s15   ;;  %s859_s17 = sadd.s32 4294967294, %s1244_s15   ;;  %s1244_s15 = sphi %s1281_s15, %s1575_s15   ;;  %s1240_s14 = sphi %s1279_s14, %s1574_s14   ;;  %s1236_s13 = sphi %s1277_s13, %s1573_s13   ;;  %s1232_s12 = sphi %s1275_s12, %s1572_s12  }
   0x7   : > { %s1300_s18 = sadd.s32 1, %s1244_s15   ;;  %s27_s19 = sadd.s32 1, %s1240_s14 }
   0x8   : > { %s24_s20 = ssub.s32 %s1244_s15, %s1300_s18  ;;  %p34_p0 = scmp.ne.s32.totalorder %s1240_s14, %s1236_s13 }
   0x9   : > { %p25_p1 = scmp.eq.s32.totalorder %s24_s20, 0  ;;  %p35_p2 = scmp.eq.s32.totalorder %s1244_s15, 0 }
   0xa   : > { %p40_p3 = scmp.ne.s32.totalorder %s1236_s13, %s1232_s12  ;;  %p41_p4 = scmp.eq.s32.totalorder %s1296_s16, 0 }
   0xb   : > { %s1312_s21 = scalar_select %p25_p1, %s1240_s14, %s27_s19  }
   0xc   : > { %p1314_p5 = por %p35_p2, %p34_p0  ;;  %p1320_p6 = por %p41_p4, %p40_p3 }
   0xd   : > { %p106_p7 = scmp.eq.s32.totalorder %s1296_s16, 1  ;;  %p112_p8 = scmp.eq.s32.totalorder %s859_s17, 1 }
   0xe   : > { %s1564_s23 = scalar_select %p1320_p6, 1, 0 }
   0xf   : > { %p860_p9 = scmp.ge.s32.totalorder %s1244_s15, 1  ;;  %p119_p10 = scmp.lt.s32.totalorder %s1244_s15, 3 }
  0x10   : > { %p1327_p11 = por %p106_p7, %p34_p0  ;;  %p1331_p12 = por %p112_p8, %p40_p3 }
  0x11   : > { %p1335_p13 = pnand %p860_p9, %p119_p10  ;;  %s1246_s27 = smov [#allocation5]  }
  0x12   : > { %s1565_s24 = scalar_select %p1327_p11, 1, 0 }
  0x13   : > { %s1566_s25 = scalar_select %p1331_p12, 1, 0 }
  0x14   : > { %p1042_p1 = pneg %p1335_p13  ;;  %s131_s28 = sshll.u32 %s1246_s27, 4  ;;  %s132_s28 = int_to_ptr.vmem [resolvable:$true] %s131_s28 }
  0x15   : > { %s1135_s29 = scalar_lea.vmem %s132_s28, 4096  ;;  %p1143_p8 = scmp.lt.s32.totalorder %s132_s28, %s132_s28 }
  0x16   : > { %p1043_p2 = pnand %p1042_p1, %p41_p4  ;;  %p1136_p7 = scmp.ne.s32.totalorder %s132_s28, %s1135_s29 }
  0x17   : > { %p1144_p6 = scmp.lt.s32.totalorder %s1135_s29, %s1135_s29 }
  0x18   : > { %p1126_p0 = pneg %p1043_p2 }
  0x19   : > { %p1145_p12 = por %p1144_p6, %p1143_p8 }
  0x1a   : > { %p1138_p11 = pnand %p1136_p7, %p1126_p0 }
  0x1c   : > { %p1139_p3 = pneg %p1138_p11 }
  0x1e   : > { %p1146_p9 = pnand %p1145_p12, %p1139_p3 }
  0x20   : > { %1149 = shalt.err (!%p1146_p9)
}
  0x21   : > { %s1247_s30 = smov 64   ;;  %s1248_s4 = smov 4  }
  0x22   : > { %1045 = dma.hbm_to_vmem [thread:$0]  (!%p1043_p2), %s1558_s1, 4096, %s132_s28, [#allocation6], %s1247_s30, %s1247_s30, %s1248_s4  }
  0x23   : > { %p1562_p10 = scmp.ge.s32.totalorder %s1244_s15, 2 }
  0x25   : > { %144 = sbr.rel (%p1562_p10) target bundleno = 76 (0x4c), region = 24 }
  0x2a   : > { %147 = sbr.rel (!%p1314_p5) target bundleno = 76 (0x4c), region = 28  ;;  %s148_s7 = sand.u32 (%p1314_p5), 1, %s1240_s14  }
  0x2b   : > { %s153_s8 = smul.u32 (%p1314_p5), 13, %s1244_s15  ;;  %s1356_s19 = scalar_lea.sflag (%p1314_p5), [#allocation3], %s148_s7 }
  0x2c   : > { %s1033_s9 = smul.u32 (%p1314_p5), 416, %s148_s7 }
  0x2d   : > { %s154_s10 = ssub.s32 (%p1314_p5), 25, %s153_s8 }
  0x2e   : > { %p155_p6 = scmp.lt.s32.totalorder (%p1314_p5), %s154_s10, 13  ;;  %s152_s20 = scalar_lea.vmem (%p1314_p5), [#allocation2], %s1033_s9 }
  0x30   : > { %s1577_s10 = smov (!%p155_p6, %s154_s10), 13 }
  0x31   : > { %s1353_s11 = sshll.u32 %s1577_s10, 9 }
  0x32   : > { %s160_s17 = ssub.s32 6656, %s1353_s11 }
  0x33   : > { %161 = vsyncadd %s1356_s19, %s160_s17  ;;  %p865_p5 = scmp.ne.s32.totalorder %s1353_s11, 0  ;;  %s916_s22 = smul.u32 6656, %s1244_s15 }
  0x34   : > { %s167_s27 = sshll.u32 %s152_s20, 4  ;;  %s1154_s7 = scalar_lea.hbm %s1557_s0, 12800  ;;  %s1366_s27 = int_to_ptr.vmem [resolvable:$true] %s167_s27 }
  0x35   : > { %s1364_s30 = scalar_lea.hbm %s1557_s0, %s916_s22 }
  0x36   : > { %s1150_s4 = scalar_lea.hbm %s1364_s30, %s1353_s11  ;;  %p1155_p2 = scmp.lt.s32.totalorder %s1364_s30, %s1557_s0 }
  0x37   : > { %p1151_p11 = scmp.ne.s32.totalorder %s1364_s30, %s1150_s4  ;;  %p1156_p0 = scmp.lt.s32.totalorder %s1154_s7, %s1150_s4 }
  0x39   : > { %p1152_p12 = pnand %p1151_p11, %p865_p5  ;;  %p1157_p7 = por %p1156_p0, %p1155_p2 }
  0x3b   : > { %p1153_p1 = pneg %p1152_p12 }
  0x3d   : > { %p1158_p3 = pnand %p1157_p7, %p1153_p1 }
  0x3f   : > { %1161 = shalt.err (!%p1158_p3)
}
  0x40   : > { %s1162_s10 = scalar_lea.vmem %s1366_s27, %s1353_s11  ;;  %s1249_s17 = smov [#allocation2]  }
  0x41   : > { %p1163_p8 = scmp.ne.s32.totalorder %s1366_s27, %s1162_s10  ;;  %s1166_s20 = sshll.u32 %s1249_s17, 4  ;;  %s1167_s20 = int_to_ptr.vmem [resolvable:$false] %s1166_s20 }
  0x42   : > { %s1168_s22 = scalar_lea.vmem %s1167_s20, 13312  ;;  %p1169_p11 = scmp.lt.s32.totalorder %s1366_s27, %s1167_s20 }
  0x43   : > { %p1164_p9 = pnand %p1163_p8, %p865_p5  ;;  %p1170_p12 = scmp.lt.s32.totalorder %s1168_s22, %s1162_s10 }
  0x45   : > { %p1165_p6 = pneg %p1164_p9  ;;  %p1171_p10 = por %p1170_p12, %p1169_p11 }
  0x47   : > { %p1172_p2 = pnand %p1171_p10, %p1165_p6 }
  0x49   : > { %1175 = shalt.err (!%p1172_p2)
}
  0x4a   : > { %s1250_s28 = smov 512   ;;  %s1251_s29 = smov 32  }
  0x4b   : > { %173 = dma.hbm_to_vmem [thread:$0]  (%p865_p5), %s1364_s30, %s1353_s11, %s1366_s27, %s1356_s19, %s1250_s28, %s1250_s28, %s1251_s29  }
  0x4c PF: > { %179 = sbr.rel (%p1335_p13) target bundleno = 395 (0x18b), region = 32  ;;  %s1395_s4 = sand.u32 (!%p1335_p13), 1, %s1236_s13  }
  0x4d   : > { %s1034_s5 = smul.u32 (!%p1335_p13), 416, %s1395_s4  ;;  %s182_s6 = scalar_lea.sflag (!%p1335_p13), [#allocation3], %s1395_s4 }
  0x4e   : > { %p1568_p10 = scmp.ne.s32.totalorder (!%p1335_p13), %s1564_s23, 0 }
  0x4f   : > { %s1399_s7 = scalar_lea.vmem (!%p1335_p13), [#allocation2], %s1034_s5 }
  0x51   : > { %1219 = dma.done.wait (%p1568_p10), %s182_s6, 6656  }
  0x52   : > { %1221 = vsyncadd (%p1568_p10), %s182_s6, 4294960640 }
  0x53   : > { %1223 = dma.done.wait (%p41_p4), [#allocation6], 4096  }
  0x54   : > { %1225 = vsyncadd (%p41_p4), [#allocation6], 4294963200  ;;  %v1092_v0 = vld [vmem:[#allocation5 + $0x78] sm:$0xff]   ;;  %v1096_v4 = vld [vmem:[#allocation5 + $0x70] sm:$0xff]   ;;  %s1035_s11 = smul.u32 104, %s1395_s4  ;;  %s757_s27 = scalar_lea.sflag [#allocation4], %s1395_s4 }
  0x55   : > { %v1093_v1 = vld [vmem:[#allocation5 + $0xf8] sm:$0xff]   ;;  %917 = vmatprep.subr.bf16.mxu0 %v1092_v0  ;;  %v1097_v5 = vld [vmem:[#allocation5 + $0xf0] sm:$0xff]   ;;  %v1100_v8 = vld [vmem:[#allocation5 + $0x68] sm:$0xff]   ;;  %p1569_p4 = scmp.ne.s32.totalorder %s1565_s24, 0 }
  0x56   : > { %v1094_v2 = vld [vmem:[#allocation5 + $0x38] sm:$0xff]   ;;  %975 = vmatprep.subr.bf16.mxu1 %v1093_v1  ;;  %v1098_v6 = vld [vmem:[#allocation5 + $0x30] sm:$0xff]   ;;  %v1101_v9 = vld [vmem:[#allocation5 + $0xe8] sm:$0xff]   ;;  %s1468_s19 = scalar_lea.vmem [#allocation7], %s1035_s11  ;;  %s764_s30 = smul.u32 (%p1569_p4), 13, %s1296_s16 }
  0x57   : > { %v1095_v3 = vld [vmem:[#allocation5 + $0xb8] sm:$0xff]   ;;  %918 = vmatpush3.bf16.msra.mxu0 %v1094_v2  ;;  %v1099_v7 = vld [vmem:[#allocation5 + $0xb0] sm:$0xff]   ;;  %v1102_v10 = vld [vmem:[#allocation5 + $0x28] sm:$0xff]  }
  0x58   : > { %976 = vmatpush3.bf16.msra.mxu1 %v1095_v3  ;;  %919 = vmatprep.subr.bf16.mxu0 %v1096_v4  ;;  %v1103_v11 = vld [vmem:[#allocation5 + $0xa8] sm:$0xff]   ;;  %v1104_v12 = vld [vmem:[#allocation5 + $0x60] sm:$0xff]   ;;  %v1108_v16 = vld [vmem:[#allocation5 + $0x58] sm:$0xff]   ;;  %s765_s8 = ssub.s32 (%p1569_p4), 25, %s764_s30 }
  0x59   : > { %977 = vmatprep.subr.bf16.mxu1 %v1097_v5  ;;  %v1105_v13 = vld [vmem:[#allocation5 + $0xe0] sm:$0xff]   ;;  %v1109_v17 = vld [vmem:[#allocation5 + $0xd8] sm:$0xff]   ;;  %v1112_v20 = vld [vmem:[#allocation5 + $0x50] sm:$0xff]   ;;  %p766_p13 = scmp.lt.s32.totalorder (%p1569_p4), %s765_s8, 13 }
  0x5a   : > { %v1106_v14 = vld [vmem:[#allocation5 + $0x20] sm:$0xff]   ;;  %v1110_v18 = vld [vmem:[#allocation5 + $0x18] sm:$0xff]   ;;  %v1113_v21 = vld [vmem:[#allocation5 + $0xd0] sm:$0xff]  }
  0x5b   : > { %920 = vmatpush3.bf16.msra.mxu0 %v1098_v6  ;;  %v1107_v15 = vld [vmem:[#allocation5 + $0xa0] sm:$0xff]   ;;  %v1111_v19 = vld [vmem:[#allocation5 + $0x98] sm:$0xff]   ;;  %v1114_v22 = vld [vmem:[#allocation5 + $0x10] sm:$0xff]  }
  0x5c   : > { %978 = vmatpush3.bf16.msra.mxu1 %v1099_v7  ;;  %921 = vmatprep.subr.bf16.mxu0 %v1100_v8  ;;  %v1115_v23 = vld [vmem:[#allocation5 + $0x90] sm:$0xff]   ;;  %v1116_v24 = vld [vmem:[#allocation5 + $0x48] sm:$0xff]   ;;  %v1120_v28 = vld [vmem:[#allocation5 + $0x40] sm:$0xff]  }
  0x5d   : > { %979 = vmatprep.subr.bf16.mxu1 %v1101_v9  ;;  %v1117_v25 = vld [vmem:[#allocation5 + $0xc8] sm:$0xff]   ;;  %v1121_v29 = vld [vmem:[#allocation5 + $0xc0] sm:$0xff]   ;;  %v227_v34 = vld [vmem:[%s1399_s7 + $0x18] sm:$0xff] }
  0x5e   : > { %v1118_v26 = vld [vmem:[#allocation5 + $0x8] sm:$0xff]   ;;  %v1122_v30 = vld [vmem:[#allocation5] sm:$0xff]   ;;  %v231_v36 = vld [vmem:[%s1399_s7 + $0x38] sm:$0xff] }
  0x5f   : > { %922 = vmatpush3.bf16.msra.mxu0 %v1102_v10  ;;  %v1119_v27 = vld [vmem:[#allocation5 + $0x88] sm:$0xff]   ;;  %v1123_v31 = vld [vmem:[#allocation5 + $0x80] sm:$0xff]   ;;  %v279_v39 = vpack.c.bf16 %v231_v36, %v227_v34  ;;  %v226_v41 = vld [vmem:[%s1399_s7 + $0x10] sm:$0xff] }
  0x60   : > { %980 = vmatpush3.bf16.msra.mxu1 %v1103_v11  ;;  %923 = vmatprep.subr.bf16.mxu0 %v1104_v12  ;;  %v225_v32 = vld [vmem:[%s1399_s7 + $0x8] sm:$0xff]  ;;  %v224_v37 = vld [vmem:[%s1399_s7] sm:$0xff]  ;;  %v230_v42 = vld [vmem:[%s1399_s7 + $0x30] sm:$0xff] }
  0x61   : > { %981 = vmatprep.subr.bf16.mxu1 %v1105_v13  ;;  %v229_v33 = vld [vmem:[%s1399_s7 + $0x28] sm:$0xff]  ;;  %v228_v38 = vld [vmem:[%s1399_s7 + $0x20] sm:$0xff]  ;;  %v278_v44 = vpack.c.bf16 %v230_v42, %v226_v41  ;;  %v235_v46 = vld [vmem:[%s1399_s7 + $0x58] sm:$0xff]  ;;  %687 = vmatprep.mubr.bf16.mxu1 %v279_v39 }
  0x62   : > { %v277_v35 = vpack.c.bf16 %v229_v33, %v225_v32  ;;  %v276_v40 = vpack.c.bf16 %v228_v38, %v224_v37  ;;  %v233_v43 = vld [vmem:[%s1399_s7 + $0x48] sm:$0xff]  ;;  %v239_v47 = vld [vmem:[%s1399_s7 + $0x78] sm:$0xff]  ;;  %v232_v50 = vld [vmem:[%s1399_s7 + $0x40] sm:$0xff] }
  0x63   : > { %924 = vmatpush3.bf16.msra.mxu0 %v1106_v14  ;;  %v237_v45 = vld [vmem:[%s1399_s7 + $0x68] sm:$0xff]  ;;  %v283_v49 = vpack.c.bf16 %v239_v47, %v235_v46  ;;  %v236_v51 = vld [vmem:[%s1399_s7 + $0x60] sm:$0xff]  ;;  %v234_v52 = vld [vmem:[%s1399_s7 + $0x50] sm:$0xff] }
  0x64   : > { %982 = vmatpush3.bf16.msra.mxu1 %v1107_v15  ;;  %925 = vmatprep.subr.bf16.mxu0 %v1108_v16  ;;  %v281_v48 = vpack.c.bf16 %v237_v45, %v233_v43  ;;  %v238_v53 = vld [vmem:[%s1399_s7 + $0x70] sm:$0xff]  ;;  %v241_v54 = vld [vmem:[%s1399_s7 + $0x88] sm:$0xff]  ;;  %v243_v56 = vld [vmem:[%s1399_s7 + $0x98] sm:$0xff]  ;;  %v280_v58 = vpack.c.bf16 %v236_v51, %v232_v50 }
  0x65   : > { %983 = vmatprep.subr.bf16.mxu1 %v1109_v17  ;;  %599 = vmatprep.mubr.bf16.mxu0 %v277_v35  ;;  %v245_v55 = vld [vmem:[%s1399_s7 + $0xa8] sm:$0xff]  ;;  %v247_v57 = vld [vmem:[%s1399_s7 + $0xb8] sm:$0xff]  ;;  %v282_v59 = vpack.c.bf16 %v238_v53, %v234_v52  ;;  %v240_v62 = vld [vmem:[%s1399_s7 + $0x80] sm:$0xff] }
  0x66   : > { %v285_v60 = vpack.c.bf16 %v245_v55, %v241_v54  ;;  %v287_v61 = vpack.c.bf16 %v247_v57, %v243_v56  ;;  %v244_v63 = vld [vmem:[%s1399_s7 + $0xa0] sm:$0xff]  ;;  %v242_v0 = vld [vmem:[%s1399_s7 + $0x90] sm:$0xff]  ;;  %v249_v2 = vld [vmem:[%s1399_s7 + $0xc8] sm:$0xff] }
  0x67   : > { %926 = vmatpush3.bf16.msra.mxu0 %v1110_v18  ;;  %v246_v1 = vld [vmem:[%s1399_s7 + $0xb0] sm:$0xff]  ;;  %v253_v3 = vld [vmem:[%s1399_s7 + $0xe8] sm:$0xff]  ;;  %v251_v4 = vld [vmem:[%s1399_s7 + $0xd8] sm:$0xff]  ;;  %v284_v6 = vpack.c.bf16 %v244_v63, %v240_v62 }
  0x68   : > { %984 = vmatpush3.bf16.msra.mxu1 %v1111_v19  ;;  %927 = vmatprep.subr.bf16.mxu0 %v1112_v20  ;;  %v255_v5 = vld [vmem:[%s1399_s7 + $0xf8] sm:$0xff]  ;;  %v286_v7 = vpack.c.bf16 %v246_v1, %v242_v0  ;;  %v289_v8 = vpack.c.bf16 %v253_v3, %v249_v2  ;;  %v248_v10 = vld [vmem:[%s1399_s7 + $0xc0] sm:$0xff]  ;;  %v250_v12 = vld [vmem:[%s1399_s7 + $0xd0] sm:$0xff] }
  0x69   : > { %985 = vmatprep.subr.bf16.mxu1 %v1113_v21  ;;  %v291_v9 = vpack.c.bf16 %v255_v5, %v251_v4  ;;  %v252_v11 = vld [vmem:[%s1399_s7 + $0xe0] sm:$0xff]  ;;  %v254_v13 = vld [vmem:[%s1399_s7 + $0xf0] sm:$0xff]  ;;  %v257_v14 = vld [vmem:[%s1399_s7 + $0x108] sm:$0xff] }
  0x6a   : > { %v261_v15 = vld [vmem:[%s1399_s7 + $0x128] sm:$0xff]  ;;  %v259_v16 = vld [vmem:[%s1399_s7 + $0x118] sm:$0xff]  ;;  %v288_v18 = vpack.c.bf16 %v252_v11, %v248_v10  ;;  %v290_v19 = vpack.c.bf16 %v254_v13, %v250_v12  ;;  %v264_v34 = vld [vmem:[%s1399_s7 + $0x140] sm:$0xff] }
  0x6b   : > { %928 = vmatpush3.bf16.msra.mxu0 %v1114_v22  ;;  %v263_v17 = vld [vmem:[%s1399_s7 + $0x138] sm:$0xff]  ;;  %v293_v20 = vpack.c.bf16 %v261_v15, %v257_v14  ;;  %v256_v22 = vld [vmem:[%s1399_s7 + $0x100] sm:$0xff]  ;;  %v266_v36 = vld [vmem:[%s1399_s7 + $0x150] sm:$0xff] }
  0x6c   : > { %986 = vmatpush3.bf16.msra.mxu1 %v1115_v23  ;;  %929 = vmatprep.subr.bf16.mxu0 %v1116_v24  ;;  %v295_v21 = vpack.c.bf16 %v263_v17, %v259_v16  ;;  %v260_v23 = vld [vmem:[%s1399_s7 + $0x120] sm:$0xff]  ;;  %v258_v24 = vld [vmem:[%s1399_s7 + $0x110] sm:$0xff]  ;;  %v273_v38 = vld [vmem:[%s1399_s7 + $0x188] sm:$0xff] }
  0x6d   : > { %987 = vmatprep.subr.bf16.mxu1 %v1117_v25  ;;  %v262_v25 = vld [vmem:[%s1399_s7 + $0x130] sm:$0xff]  ;;  %v268_v35 = vld [vmem:[%s1399_s7 + $0x160] sm:$0xff]  ;;  %v275_v39 = vld [vmem:[%s1399_s7 + $0x198] sm:$0xff]  ;;  %v301_v42 = vpack.c.bf16 %v273_v38, %v273_v38 }
  0x6e   : > { %v270_v37 = vld [vmem:[%s1399_s7 + $0x170] sm:$0xff]  ;;  %v303_v43 = vpack.c.bf16 %v275_v39, %v275_v39  ;;  %v1464_v50 = vld [vmem:[%s1559_s2] ss:$0 sm:$0xff] }
  0x6f   : > { %930 = vmatpush3.bf16.msra.mxu0 %v1118_v26  ;;  %v265_v26 = vld [vmem:[%s1399_s7 + $0x148] sm:$0xff]  ;;  %v298_v41 = vpack.c.bf16 %v270_v37, %v266_v36  ;;  %v274_v45 = vld [vmem:[%s1399_s7 + $0x190] sm:$0xff] }
  0x70   : > { %988 = vmatpush3.bf16.msra.mxu1 %v1119_v27  ;;  %931 = vmatprep.subr.bf16.mxu0 %v1120_v28  ;;  %v269_v27 = vld [vmem:[%s1399_s7 + $0x168] sm:$0xff]  ;;  %v267_v28 = vld [vmem:[%s1399_s7 + $0x158] sm:$0xff]  ;;  %v302_v47 = vpack.c.bf16 %v274_v45, %v274_v45 }
  0x71   : > { %989 = vmatprep.subr.bf16.mxu1 %v1121_v29  ;;  %v271_v29 = vld [vmem:[%s1399_s7 + $0x178] sm:$0xff]  ;;  %v297_v32 = vpack.c.bf16 %v269_v27, %v265_v26 }
  0x72   : > { %v299_v33 = vpack.c.bf16 %v271_v29, %v267_v28 }
  0x73   : > { %932 = vmatpush3.bf16.msra.mxu0 %v1122_v30  ;;  %v292_v30 = vpack.c.bf16 %v260_v23, %v256_v22 }
  0x74   : > { %990 = vmatpush3.bf16.msra.mxu1 %v1123_v31  ;;  %v294_v31 = vpack.c.bf16 %v262_v25, %v258_v24 }
  0x76   : > { %600 = vmatmul.mubr.bf16.vlgmr.msra.gmra.mxu0 %v276_v40  ;;  %v296_v40 = vpack.c.bf16 %v268_v35, %v264_v34 }
  0x77   : > { %688 = vmatmul.mubr.bf16.vlgmr.msra.gmra.mxu1 %v278_v44  ;;  %607 = vmatprep.mubr.bf16.mxu0 %v281_v48  ;;  %v272_v44 = vld [vmem:[%s1399_s7 + $0x180] sm:$0xff] }
  0x78   : > { %695 = vmatprep.mubr.bf16.mxu1 %v283_v49  ;;  %v300_v46 = vpack.c.bf16 %v272_v44, %v272_v44 }
  0x7e   : > { %608 = vmatmul.mubr.bf16.gmra.mxu0 %v280_v58 }
  0x7f   : > { %696 = vmatmul.mubr.bf16.gmra.mxu1 %v282_v59  ;;  %615 = vmatprep.mubr.bf16.mxu0 %v285_v60 }
  0x80   : > { %703 = vmatprep.mubr.bf16.mxu1 %v287_v61 }
  0x86   : > { %616 = vmatmul.mubr.bf16.gmra.mxu0 %v284_v6 }
  0x87   : > { %704 = vmatmul.mubr.bf16.gmra.mxu1 %v286_v7  ;;  %623 = vmatprep.mubr.bf16.mxu0 %v289_v8 }
  0x88   : > { %711 = vmatprep.mubr.bf16.mxu1 %v291_v9 }
  0x8e   : > { %624 = vmatmul.mubr.bf16.gmra.mxu0 %v288_v18 }
  0x8f   : > { %712 = vmatmul.mubr.bf16.gmra.mxu1 %v290_v19  ;;  %631 = vmatprep.mubr.bf16.mxu0 %v293_v20 }
  0x90   : > { %719 = vmatprep.mubr.bf16.mxu1 %v295_v21 }
  0x96   : > { %632 = vmatmul.mubr.bf16.gmra.mxu0 %v292_v30 }
  0x97   : > { %720 = vmatmul.mubr.bf16.gmra.mxu1 %v294_v31  ;;  %639 = vmatprep.mubr.bf16.mxu0 %v297_v32 }
  0x98   : > { %727 = vmatprep.mubr.bf16.mxu1 %v299_v33 }
  0x9e   : > { %640 = vmatmul.mubr.bf16.gmra.mxu0 %v296_v40 }
  0x9f   : > { %728 = vmatmul.mubr.bf16.gmra.mxu1 %v298_v41  ;;  %647 = vmatprep.mubr.bf16.mxu0 %v301_v42 }
  0xa0   : > { %735 = vmatprep.mubr.bf16.mxu1 %v303_v43 }
  0xa6   : > { %648 = vmatmul.mubr.bf16.gmra.mxu0 %v300_v46 }
  0xa7   : > { %736 = vmatmul.mubr.bf16.gmra.mxu1 %v302_v47 }
 0x136   : > { %v933_v48 = vpop.f32.mrf.mxu0 }
 0x137   : > { %v991_v49 = vpop.f32.mrf.mxu1 }
 0x138   : > { %v934_v51 = vpop.f32.mrf.mxu0 }
 0x139   : > { %v935_v52 = vadd.f32 %v934_v51, %v933_v48  ;;  %v992_v53 = vpop.f32.mrf.mxu1 }
 0x13a   : > { %v936_v54 = vpop.f32.mrf.mxu0  ;;  %v993_v56 = vadd.f32 %v992_v53, %v991_v49 }
 0x13b   : > { %v602_v55 = vadd.f32 %v935_v52, %v1464_v50  ;;  %v994_v57 = vpop.f32.mrf.mxu1 }
 0x13c   : > { %v937_v58 = vpop.f32.mrf.mxu0 }
 0x13d   : > { %v690_v59 = vadd.f32 %v993_v56, %v602_v55  ;;  %v938_v60 = vadd.f32 %v937_v58, %v936_v54  ;;  %v995_v61 = vpop.f32.mrf.mxu1 }
 0x13e   : > { %v939_v62 = vpop.f32.mrf.mxu0  ;;  %v996_v0 = vadd.f32 %v995_v61, %v994_v57 }
 0x13f   : > { %743 = vst [vmem:[%s1468_s19] sm:$0xff] %v690_v59  ;;  %v605_v63 = vadd.f32 %v938_v60, %v1464_v50  ;;  %v997_v1 = vpop.f32.mrf.mxu1 }
 0x140   : > { %v940_v2 = vpop.f32.mrf.mxu0 }
 0x141   : > { %v693_v3 = vadd.f32 %v996_v0, %v605_v63  ;;  %v941_v4 = vadd.f32 %v940_v2, %v939_v62  ;;  %v998_v5 = vpop.f32.mrf.mxu1 }
 0x142   : > { %v942_v6 = vpop.f32.mrf.mxu0  ;;  %v999_v8 = vadd.f32 %v998_v5, %v997_v1 }
 0x143   : > { %744 = vst [vmem:[%s1468_s19 + $0x8] sm:$0xff] %v693_v3  ;;  %v610_v7 = vadd.f32 %v941_v4, %v1464_v50  ;;  %v1000_v9 = vpop.f32.mrf.mxu1 }
 0x144   : > { %v943_v10 = vpop.f32.mrf.mxu0 }
 0x145   : > { %v698_v11 = vadd.f32 %v999_v8, %v610_v7  ;;  %v944_v12 = vadd.f32 %v943_v10, %v942_v6  ;;  %v1001_v13 = vpop.f32.mrf.mxu1 }
 0x146   : > { %v945_v14 = vpop.f32.mrf.mxu0  ;;  %v1002_v16 = vadd.f32 %v1001_v13, %v1000_v9 }
 0x147   : > { %745 = vst [vmem:[%s1468_s19 + $0x10] sm:$0xff] %v698_v11  ;;  %v613_v15 = vadd.f32 %v944_v12, %v1464_v50  ;;  %v1003_v17 = vpop.f32.mrf.mxu1 }
 0x148   : > { %v946_v18 = vpop.f32.mrf.mxu0 }
 0x149   : > { %v701_v19 = vadd.f32 %v1002_v16, %v613_v15  ;;  %v947_v20 = vadd.f32 %v946_v18, %v945_v14  ;;  %v1004_v21 = vpop.f32.mrf.mxu1 }
 0x14a   : > { %v948_v22 = vpop.f32.mrf.mxu0  ;;  %v1005_v24 = vadd.f32 %v1004_v21, %v1003_v17 }
 0x14b   : > { %746 = vst [vmem:[%s1468_s19 + $0x18] sm:$0xff] %v701_v19  ;;  %v618_v23 = vadd.f32 %v947_v20, %v1464_v50  ;;  %v1006_v25 = vpop.f32.mrf.mxu1 }
 0x14c   : > { %v949_v26 = vpop.f32.mrf.mxu0 }
 0x14d   : > { %v706_v27 = vadd.f32 %v1005_v24, %v618_v23  ;;  %v950_v28 = vadd.f32 %v949_v26, %v948_v22  ;;  %v1007_v29 = vpop.f32.mrf.mxu1 }
 0x14e   : > { %v951_v30 = vpop.f32.mrf.mxu0  ;;  %v1008_v32 = vadd.f32 %v1007_v29, %v1006_v25 }
 0x14f   : > { %747 = vst [vmem:[%s1468_s19 + $0x20] sm:$0xff] %v706_v27  ;;  %v621_v31 = vadd.f32 %v950_v28, %v1464_v50  ;;  %v1009_v33 = vpop.f32.mrf.mxu1 }
 0x150   : > { %v952_v34 = vpop.f32.mrf.mxu0 }
 0x151   : > { %v709_v35 = vadd.f32 %v1008_v32, %v621_v31  ;;  %v953_v36 = vadd.f32 %v952_v34, %v951_v30  ;;  %v1010_v37 = vpop.f32.mrf.mxu1 }
 0x152   : > { %v954_v38 = vpop.f32.mrf.mxu0  ;;  %v1011_v40 = vadd.f32 %v1010_v37, %v1009_v33 }
 0x153   : > { %748 = vst [vmem:[%s1468_s19 + $0x28] sm:$0xff] %v709_v35  ;;  %v626_v39 = vadd.f32 %v953_v36, %v1464_v50  ;;  %v1012_v41 = vpop.f32.mrf.mxu1 }
 0x154   : > { %v955_v42 = vpop.f32.mrf.mxu0 }
 0x155   : > { %v714_v43 = vadd.f32 %v1011_v40, %v626_v39  ;;  %v956_v44 = vadd.f32 %v955_v42, %v954_v38  ;;  %v1013_v45 = vpop.f32.mrf.mxu1 }
 0x156   : > { %v957_v46 = vpop.f32.mrf.mxu0  ;;  %v1014_v48 = vadd.f32 %v1013_v45, %v1012_v41 }
 0x157   : > { %749 = vst [vmem:[%s1468_s19 + $0x30] sm:$0xff] %v714_v43  ;;  %v629_v47 = vadd.f32 %v956_v44, %v1464_v50  ;;  %v1015_v49 = vpop.f32.mrf.mxu1 }
 0x158   : > { %v958_v51 = vpop.f32.mrf.mxu0 }
 0x159   : > { %v717_v52 = vadd.f32 %v1014_v48, %v629_v47  ;;  %v959_v53 = vadd.f32 %v958_v51, %v957_v46  ;;  %v1016_v54 = vpop.f32.mrf.mxu1 }
 0x15a   : > { %v960_v55 = vpop.f32.mrf.mxu0  ;;  %v1017_v57 = vadd.f32 %v1016_v54, %v1015_v49 }
 0x15b   : > { %750 = vst [vmem:[%s1468_s19 + $0x38] sm:$0xff] %v717_v52  ;;  %v634_v56 = vadd.f32 %v959_v53, %v1464_v50  ;;  %v1018_v58 = vpop.f32.mrf.mxu1 }
 0x15c   : > { %v961_v59 = vpop.f32.mrf.mxu0 }
 0x15d   : > { %v722_v60 = vadd.f32 %v1017_v57, %v634_v56  ;;  %v962_v61 = vadd.f32 %v961_v59, %v960_v55  ;;  %v1019_v62 = vpop.f32.mrf.mxu1 }
 0x15e   : > { %v963_v63 = vpop.f32.mrf.mxu0  ;;  %v1020_v1 = vadd.f32 %v1019_v62, %v1018_v58 }
 0x15f   : > { %751 = vst [vmem:[%s1468_s19 + $0x40] sm:$0xff] %v722_v60  ;;  %v637_v0 = vadd.f32 %v962_v61, %v1464_v50  ;;  %v1021_v2 = vpop.f32.mrf.mxu1 }
 0x160   : > { %v964_v3 = vpop.f32.mrf.mxu0 }
 0x161   : > { %v725_v4 = vadd.f32 %v1020_v1, %v637_v0  ;;  %v965_v5 = vadd.f32 %v964_v3, %v963_v63  ;;  %v1022_v6 = vpop.f32.mrf.mxu1 }
 0x162   : > { %v966_v7 = vpop.f32.mrf.mxu0  ;;  %v1023_v9 = vadd.f32 %v1022_v6, %v1021_v2 }
 0x163   : > { %752 = vst [vmem:[%s1468_s19 + $0x48] sm:$0xff] %v725_v4  ;;  %v642_v8 = vadd.f32 %v965_v5, %v1464_v50  ;;  %v1024_v10 = vpop.f32.mrf.mxu1 }
 0x164   : > { %v967_v11 = vpop.f32.mrf.mxu0 }
 0x165   : > { %v730_v12 = vadd.f32 %v1023_v9, %v642_v8  ;;  %v968_v13 = vadd.f32 %v967_v11, %v966_v7  ;;  %v1025_v14 = vpop.f32.mrf.mxu1 }
 0x166   : > { %v969_v15 = vpop.f32.mrf.mxu0  ;;  %v1026_v17 = vadd.f32 %v1025_v14, %v1024_v10 }
 0x167   : > { %753 = vst [vmem:[%s1468_s19 + $0x50] sm:$0xff] %v730_v12  ;;  %v645_v16 = vadd.f32 %v968_v13, %v1464_v50  ;;  %v1027_v18 = vpop.f32.mrf.mxu1 }
 0x168   : > { %v970_v19 = vpop.f32.mrf.mxu0 }
 0x169   : > { %v733_v20 = vadd.f32 %v1026_v17, %v645_v16  ;;  %v971_v21 = vadd.f32 %v970_v19, %v969_v15  ;;  %v1028_v22 = vpop.f32.mrf.mxu1 }
 0x16a   : > { %v972_v23 = vpop.f32.mrf.mxu0  ;;  %v1029_v25 = vadd.f32 %v1028_v22, %v1027_v18 }
 0x16b   : > { %754 = vst [vmem:[%s1468_s19 + $0x58] sm:$0xff] %v733_v20  ;;  %v650_v24 = vadd.f32 %v971_v21, %v1464_v50  ;;  %v1030_v26 = vpop.f32.mrf.mxu1  ;;  %763 = sbr.rel (!%p1569_p4) target bundleno = 395 (0x18b), region = 44 }
 0x16c   : > { %v973_v27 = vpop.f32.mrf.mxu0 }
 0x16d   : > { %v738_v28 = vadd.f32 %v1029_v25, %v650_v24  ;;  %v1031_v29 = vpop.f32.mrf.mxu1 }
 0x16f   : > { %755 = vst [vmem:[%s1468_s19 + $0x60] sm:$0xff] %v738_v28 }
 0x170   : > { %s1579_s8 = smov (!%p766_p13, %s765_s8), 13 }
 0x171   : > { %s1499_s9 = sshll.u32 %s1579_s8, 7 }
 0x172   : > { %s770_s10 = ssub.s32 1664, %s1499_s9 }
 0x173   : > { %771 = vsyncadd %s757_s27, %s770_s10  ;;  %p906_p5 = scmp.ne.s32.totalorder %s1499_s9, 0  ;;  %s915_s24 = smul.u32 1664, %s1296_s16 }
 0x174   : > { %s776_s17 = sshll.u32 %s1468_s19, 4  ;;  %s1252_s5 = smov [#allocation7]   ;;  %s1512_s17 = int_to_ptr.vmem [resolvable:$true] %s776_s17 }
 0x175   : > { %s1510_s28 = scalar_lea.hbm %s1560_s3, %s915_s24  ;;  %s1176_s29 = scalar_lea.vmem %s1512_s17, %s1499_s9 }
 0x176   : > { %p1177_p1 = scmp.ne.s32.totalorder %s1512_s17, %s1176_s29  ;;  %s1180_s6 = sshll.u32 %s1252_s5, 4  ;;  %s1181_s6 = int_to_ptr.vmem [resolvable:$false] %s1180_s6 }
 0x177   : > { %s1182_s16 = scalar_lea.vmem %s1181_s6, 3328  ;;  %p1183_p3 = scmp.lt.s32.totalorder %s1512_s17, %s1181_s6 }
 0x178   : > { %p1178_p0 = pnand %p1177_p1, %p906_p5  ;;  %p1184_p8 = scmp.lt.s32.totalorder %s1182_s16, %s1176_s29 }
 0x17a   : > { %p1179_p7 = pneg %p1178_p0  ;;  %p1185_p9 = por %p1184_p8, %p1183_p3 }
 0x17c   : > { %p1186_p6 = pnand %p1185_p9, %p1179_p7 }
 0x17e   : > { %1189 = shalt.err (!%p1186_p6)
}
 0x17f   : > { %s1190_s7 = scalar_lea.hbm %s1510_s28, %s1499_s9  ;;  %s1194_s11 = scalar_lea.hbm %s1560_s3, 3200 }
 0x180   : > { %p1191_p11 = scmp.ne.s32.totalorder %s1510_s28, %s1190_s7  ;;  %p1195_p10 = scmp.lt.s32.totalorder %s1510_s28, %s1560_s3 }
 0x181   : > { %p1196_p4 = scmp.lt.s32.totalorder %s1194_s11, %s1190_s7 }
 0x182   : > { %p1192_p12 = pnand %p1191_p11, %p906_p5 }
 0x183   : > { %p1197_p13 = por %p1196_p4, %p1195_p10 }
 0x184   : > { %p1193_p2 = pneg %p1192_p12 }
 0x186   : > { %p1198_p1 = pnand %p1197_p13, %p1193_p2 }
 0x188   : > { %1201 = shalt.err (!%p1198_p1)
}
 0x189   : > { %s1253_s8 = smov 128   ;;  %s1254_s10 = smov 8  }
 0x18a   : > { %782 = dma.vmem_to_hbm [thread:$0]  (%p906_p5), %s1512_s17, %s1499_s9, %s1510_s28, %s757_s27, %s1253_s8, %s1253_s8, %s1254_s10  }
 0x18b PF: > { %s791_s24 = sand.u32 1, %s1232_s12   ;;  %p1570_p0 = scmp.ne.s32.totalorder %s1566_s25, 0 }
 0x18c   : > { %p1571_p7 = scmp.ge.s32.totalorder %s1244_s15, 2  ;;  %s792_s20 = scalar_lea.sflag [#allocation4], %s791_s24 }
 0x18e   : > { %p1047_p3 = pnand %p1571_p7, %p1570_p0 }
 0x190   : > { %p1048_p8 = pneg %p1047_p3 }
 0x192   : > { %1227 = dma.done.wait (%p1048_p8), %s792_s20, 1664  }
 0x193   : > { %1229 = vsyncadd (%p1048_p8), %s792_s20, 4294965632  ;;  %p17_p9 = scmp.ge.s32.totalorder %s1300_s18, 4   ;;  %s1572_s12 = smov %s1236_s13 }
 0x194   : > { %s1573_s13 = smov %s1240_s14  ;;  %s1574_s14 = smov %s1312_s21 }
 0x195   : > { %s1575_s15 = smov %s1300_s18  ;;  %19 = sbr.rel (!%p17_p9) target bundleno = 6 (0x6), region = 81 }
 0x19a   :  { %797 = vsyncpa [#allocation3], 1 }
 0x19b   :  { %799 = vsyncpa [#allocation3 + $0x1], 1 }
 0x19c   :  { %800 = vsyncpa [#allocation6], 1 }
 0x19d   :  { %801 = vsyncpa [#allocation4], 1 }
 0x19e   :  { %803 = vsyncpa [#allocation4 + $0x1], 1 }

</bundles_post_ra>
